<compile_context>
chip_gen: v7x
topology: tpu7x:2x2x1
jax: 0.10.0
libtpu: 0.0.40
codegen_flags: <defaults>
</compile_context>

<pallas_src>
import jax
import jax.numpy as jnp
from jax.experimental import pallas as pl
from jax.experimental.pallas import tpu as pltpu

NEG_SLOPE = 0.01      # PyTorch nn.LeakyReLU default
LANE = 128            # TPU lane width; everything is padded to 128 lanes
N_LAYERS = 6          # after fusing the activation-free w3/hw0 pair
MAX_TILE = 1024       # batch tile upper bound (2 x (1024,128) f32 dbl-buf ~ 2 MiB)


def _leaky_relu(x):
    return jnp.where(x > 0, x, NEG_SLOPE * x)


def _round_up(x, m):
    return (x + m - 1) // m * m


def combined_model_kernel(x_ref, w_ref, b_ref, out_ref):
    # x_ref:  (tb, 128)        zero-padded activations
    # w_ref:  (6, 128, 128)    zero-padded weights, layer-major (resident)
    # b_ref:  (6, 1, 128)      zero-padded biases as broadcastable rows (resident)
    # out_ref:(tb, 128)        lane-dense output (first 3 cols valid)
    h = x_ref[...]
    for l in range(N_LAYERS - 1):
        h = jnp.dot(h, w_ref[l], preferred_element_type=jnp.float32) + b_ref[l]
        h = _leaky_relu(h)
    h = (jnp.dot(h, w_ref[N_LAYERS - 1], preferred_element_type=jnp.float32)
         + b_ref[N_LAYERS - 1])
    out_ref[...] = h.astype(out_ref.dtype)


@jax.jit
def combined_model_forward(clinical_data, params):
    (w0, b0, w1, b1, w2, b2, w3, b3,
     hw0, hb0, hw1, hb1, hw2, hb2) = params
    B, F = clinical_data.shape
    out_classes = hb2.shape[0]

    # --- Pre-fuse the activation-free pair: (h @ w3 + b3) @ hw0 + hb0 ---
    w34 = w3 @ hw0                 # (8, 32)
    b34 = b3 @ hw0 + hb0           # (32,)

    ws = [w0, w1, w2, w34, hw1, hw2]
    bs = [b0, b1, b2, b34, hb1, hb2]

    # --- Pack params into lane-aligned buffers (2 grid-invariant DMAs) ---
    wbuf = jnp.zeros((N_LAYERS, LANE, LANE), jnp.float32)
    bbuf = jnp.zeros((N_LAYERS, 1, LANE), jnp.float32)
    for l, (w, b) in enumerate(zip(ws, bs)):
        fi, fo = w.shape
        wbuf = wbuf.at[l, :fi, :fo].set(w.astype(jnp.float32))
        bbuf = bbuf.at[l, 0, :fo].set(b.astype(jnp.float32))

    # --- Lane-dense, batch-padded input ---
    tb = min(MAX_TILE, _round_up(B, 8))      # (8,128)-aligned batch tile
    b_pad = _round_up(B, tb)
    xpad = jnp.zeros((b_pad, LANE), jnp.float32)
    xpad = xpad.at[:B, :F].set(clinical_data.astype(jnp.float32))

    grid = (b_pad // tb,)
    flops = 2 * b_pad * LANE * LANE * N_LAYERS
    bytes_accessed = 4 * (2 * b_pad * LANE + N_LAYERS * LANE * LANE + N_LAYERS * LANE)

    out_padded = pl.pallas_call(
        combined_model_kernel,
        out_shape=jax.ShapeDtypeStruct((b_pad, LANE), jnp.float32),
        grid=grid,
        in_specs=[
            pl.BlockSpec((tb, LANE), lambda i: (i, 0)),                 # x: streamed over batch
            pl.BlockSpec((N_LAYERS, LANE, LANE), lambda i: (0, 0, 0)),  # weights: resident
            pl.BlockSpec((N_LAYERS, 1, LANE), lambda i: (0, 0, 0)),     # biases: resident
        ],
        out_specs=pl.BlockSpec((tb, LANE), lambda i: (i, 0)),
        compiler_params=pltpu.CompilerParams(
            dimension_semantics=("parallel",)),
        cost_estimate=pl.CostEstimate(
            flops=flops, transcendentals=0, bytes_accessed=bytes_accessed),
    )(xpad, wbuf, bbuf)

    return out_padded[:B, :out_classes]


def init_params(key):
    """Deterministic init mimicking torch.nn.Linear (uniform +-1/sqrt(fan_in)).

    Weights stored as (in_features, out_features)."""
    layer_dims = [
        (48, 32), (32, 16), (16, 8), (8, 4),   # MLP
        (4, 32), (32, 16), (16, 3),            # combined head
    ]
    params = []
    for (fan_in, fan_out) in layer_dims:
        key, kw, kb = jax.random.split(key, 3)
        bound = 1.0 / jnp.sqrt(jnp.float32(fan_in))
        w = jax.random.uniform(kw, (fan_in, fan_out), jnp.float32, -bound, bound)
        b = jax.random.uniform(kb, (fan_out,), jnp.float32, -bound, bound)
        params.append(w)
        params.append(b)
    return params


def reference_forward(clinical_data, params):
    """Pure-JAX reference (unfused), mirrors the PyTorch forward at inference."""
    w0, b0, w1, b1, w2, b2, w3, b3, hw0, hb0, hw1, hb1, hw2, hb2 = params
    h = clinical_data
    h = _leaky_relu(h @ w0 + b0)
    h = _leaky_relu(h @ w1 + b1)
    h = _leaky_relu(h @ w2 + b2)
    h = h @ w3 + b3
    h = _leaky_relu(h @ hw0 + hb0)
    h = _leaky_relu(h @ hw1 + hb1)
    h = h @ hw2 + hb2
    return h


if __name__ == "__main__":
    key = jax.random.PRNGKey(0)
    key, k_data = jax.random.split(key)

    B, F = 8, 48  # batch=8, clinical features=48 (mlp_input_size)
    clinical_data = jax.random.normal(k_data, (B, F), jnp.float32)

    params = init_params(key)

    out = combined_model_forward(clinical_data, params)
    out = jax.block_until_ready(out)

    ref = reference_forward(clinical_data, params)
    assert out.shape == (B, 3), out.shape
    # w3/hw0 pre-fusion reassociates fp adds -> allow a hair of slack.
    assert jnp.allclose(out, ref, atol=1e-4, rtol=1e-4), "mismatch vs reference"

    print("KERNEL_OK")
</pallas_src>

<mosaic_0001>
module attributes {stable_mosaic.version = 11 : i64} {
  func.func @combined_model_kernel(%arg0: i32, %arg1: memref<8x128xf32, #tpu.memory_space<vmem>>, %arg2: memref<6x128x128xf32, #tpu.memory_space<vmem>>, %arg3: memref<6x1x128xf32, #tpu.memory_space<vmem>>, %arg4: memref<8x128xf32, #tpu.memory_space<vmem>>) attributes {dimension_semantics = [#tpu.dimension_semantics<parallel>], iteration_bounds = array<i64: 1>, scalar_prefetch = 0 : i64, scratch_operands = 0 : i64, tpu.core_type = #tpu.core_type<tc>, window_params = [{transform_indices = @transform_0, window_bounds = array<i64: 8, 128>}, {pipeline_mode = #tpu.pipeline_mode<synchronous>, transform_indices = @transform_1, window_bounds = array<i64: 6, 128, 128>}, {pipeline_mode = #tpu.pipeline_mode<synchronous>, transform_indices = @transform_2, window_bounds = array<i64: 6, 1, 128>}, {transform_indices = @transform_3, window_bounds = array<i64: 8, 128>}]} {
    %c0 = arith.constant 0 : index
    %c0_0 = arith.constant 0 : index
    %0 = vector.load %arg1[%c0, %c0_0] : memref<8x128xf32, #tpu.memory_space<vmem>>, vector<8x128xf32>
    %c0_1 = arith.constant 0 : index
    %c0_2 = arith.constant 0 : index
    %c0_3 = arith.constant 0 : index
    %1 = vector.load %arg2[%c0_1, %c0_2, %c0_3] : memref<6x128x128xf32, #tpu.memory_space<vmem>>, vector<1x128x128xf32>
    %2 = vector.shape_cast %1 : vector<1x128x128xf32> to vector<128x128xf32>
    %cst = arith.constant dense<0.000000e+00> : vector<8x128xf32>
    %3 = tpu.matmul %0, %2, %cst {dimension_numbers = #tpu.dot_dimension_numbers<[1], [0], [0], [1], [0, 0, 1, 1], [], []>} : vector<8x128xf32>, vector<128x128xf32>, vector<8x128xf32> -> vector<8x128xf32>
    %c0_4 = arith.constant 0 : index
    %c0_5 = arith.constant 0 : index
    %c0_6 = arith.constant 0 : index
    %4 = vector.load %arg3[%c0_4, %c0_5, %c0_6] : memref<6x1x128xf32, #tpu.memory_space<vmem>>, vector<1x1x128xf32>
    %5 = vector.shape_cast %4 : vector<1x1x128xf32> to vector<1x128xf32>
    %6 = vector.broadcast %5 : vector<1x128xf32> to vector<8x128xf32>
    %7 = arith.addf %3, %6 : vector<8x128xf32>
    %cst_7 = arith.constant 0.000000e+00 : f32
    %8 = vector.broadcast %cst_7 : f32 to vector<8x128xf32>
    %9 = arith.cmpf ogt, %7, %8 : vector<8x128xf32>
    %cst_8 = arith.constant 0.00999999977 : f32
    %10 = vector.broadcast %cst_8 : f32 to vector<8x128xf32>
    %11 = arith.mulf %10, %7 : vector<8x128xf32>
    %12 = arith.select %9, %7, %11 : vector<8x128xi1>, vector<8x128xf32>
    %c1 = arith.constant 1 : index
    %c0_9 = arith.constant 0 : index
    %c0_10 = arith.constant 0 : index
    %13 = vector.load %arg2[%c1, %c0_9, %c0_10] : memref<6x128x128xf32, #tpu.memory_space<vmem>>, vector<1x128x128xf32>
    %14 = vector.shape_cast %13 : vector<1x128x128xf32> to vector<128x128xf32>
    %cst_11 = arith.constant dense<0.000000e+00> : vector<8x128xf32>
    %15 = tpu.matmul %12, %14, %cst_11 {dimension_numbers = #tpu.dot_dimension_numbers<[1], [0], [0], [1], [0, 0, 1, 1], [], []>} : vector<8x128xf32>, vector<128x128xf32>, vector<8x128xf32> -> vector<8x128xf32>
    %c1_12 = arith.constant 1 : index
    %c0_13 = arith.constant 0 : index
    %c0_14 = arith.constant 0 : index
    %16 = vector.load %arg3[%c1_12, %c0_13, %c0_14] : memref<6x1x128xf32, #tpu.memory_space<vmem>>, vector<1x1x128xf32>
    %17 = vector.shape_cast %16 : vector<1x1x128xf32> to vector<1x128xf32>
    %18 = vector.broadcast %17 : vector<1x128xf32> to vector<8x128xf32>
    %19 = arith.addf %15, %18 : vector<8x128xf32>
    %cst_15 = arith.constant 0.000000e+00 : f32
    %20 = vector.broadcast %cst_15 : f32 to vector<8x128xf32>
    %21 = arith.cmpf ogt, %19, %20 : vector<8x128xf32>
    %cst_16 = arith.constant 0.00999999977 : f32
    %22 = vector.broadcast %cst_16 : f32 to vector<8x128xf32>
    %23 = arith.mulf %22, %19 : vector<8x128xf32>
    %24 = arith.select %21, %19, %23 : vector<8x128xi1>, vector<8x128xf32>
    %c2 = arith.constant 2 : index
    %c0_17 = arith.constant 0 : index
    %c0_18 = arith.constant 0 : index
    %25 = vector.load %arg2[%c2, %c0_17, %c0_18] : memref<6x128x128xf32, #tpu.memory_space<vmem>>, vector<1x128x128xf32>
    %26 = vector.shape_cast %25 : vector<1x128x128xf32> to vector<128x128xf32>
    %cst_19 = arith.constant dense<0.000000e+00> : vector<8x128xf32>
    %27 = tpu.matmul %24, %26, %cst_19 {dimension_numbers = #tpu.dot_dimension_numbers<[1], [0], [0], [1], [0, 0, 1, 1], [], []>} : vector<8x128xf32>, vector<128x128xf32>, vector<8x128xf32> -> vector<8x128xf32>
    %c2_20 = arith.constant 2 : index
    %c0_21 = arith.constant 0 : index
    %c0_22 = arith.constant 0 : index
    %28 = vector.load %arg3[%c2_20, %c0_21, %c0_22] : memref<6x1x128xf32, #tpu.memory_space<vmem>>, vector<1x1x128xf32>
    %29 = vector.shape_cast %28 : vector<1x1x128xf32> to vector<1x128xf32>
    %30 = vector.broadcast %29 : vector<1x128xf32> to vector<8x128xf32>
    %31 = arith.addf %27, %30 : vector<8x128xf32>
    %cst_23 = arith.constant 0.000000e+00 : f32
    %32 = vector.broadcast %cst_23 : f32 to vector<8x128xf32>
    %33 = arith.cmpf ogt, %31, %32 : vector<8x128xf32>
    %cst_24 = arith.constant 0.00999999977 : f32
    %34 = vector.broadcast %cst_24 : f32 to vector<8x128xf32>
    %35 = arith.mulf %34, %31 : vector<8x128xf32>
    %36 = arith.select %33, %31, %35 : vector<8x128xi1>, vector<8x128xf32>
    %c3 = arith.constant 3 : index
    %c0_25 = arith.constant 0 : index
    %c0_26 = arith.constant 0 : index
    %37 = vector.load %arg2[%c3, %c0_25, %c0_26] : memref<6x128x128xf32, #tpu.memory_space<vmem>>, vector<1x128x128xf32>
    %38 = vector.shape_cast %37 : vector<1x128x128xf32> to vector<128x128xf32>
    %cst_27 = arith.constant dense<0.000000e+00> : vector<8x128xf32>
    %39 = tpu.matmul %36, %38, %cst_27 {dimension_numbers = #tpu.dot_dimension_numbers<[1], [0], [0], [1], [0, 0, 1, 1], [], []>} : vector<8x128xf32>, vector<128x128xf32>, vector<8x128xf32> -> vector<8x128xf32>
    %c3_28 = arith.constant 3 : index
    %c0_29 = arith.constant 0 : index
    %c0_30 = arith.constant 0 : index
    %40 = vector.load %arg3[%c3_28, %c0_29, %c0_30] : memref<6x1x128xf32, #tpu.memory_space<vmem>>, vector<1x1x128xf32>
    %41 = vector.shape_cast %40 : vector<1x1x128xf32> to vector<1x128xf32>
    %42 = vector.broadcast %41 : vector<1x128xf32> to vector<8x128xf32>
    %43 = arith.addf %39, %42 : vector<8x128xf32>
    %cst_31 = arith.constant 0.000000e+00 : f32
    %44 = vector.broadcast %cst_31 : f32 to vector<8x128xf32>
    %45 = arith.cmpf ogt, %43, %44 : vector<8x128xf32>
    %cst_32 = arith.constant 0.00999999977 : f32
    %46 = vector.broadcast %cst_32 : f32 to vector<8x128xf32>
    %47 = arith.mulf %46, %43 : vector<8x128xf32>
    %48 = arith.select %45, %43, %47 : vector<8x128xi1>, vector<8x128xf32>
    %c4 = arith.constant 4 : index
    %c0_33 = arith.constant 0 : index
    %c0_34 = arith.constant 0 : index
    %49 = vector.load %arg2[%c4, %c0_33, %c0_34] : memref<6x128x128xf32, #tpu.memory_space<vmem>>, vector<1x128x128xf32>
    %50 = vector.shape_cast %49 : vector<1x128x128xf32> to vector<128x128xf32>
    %cst_35 = arith.constant dense<0.000000e+00> : vector<8x128xf32>
    %51 = tpu.matmul %48, %50, %cst_35 {dimension_numbers = #tpu.dot_dimension_numbers<[1], [0], [0], [1], [0, 0, 1, 1], [], []>} : vector<8x128xf32>, vector<128x128xf32>, vector<8x128xf32> -> vector<8x128xf32>
    %c4_36 = arith.constant 4 : index
    %c0_37 = arith.constant 0 : index
    %c0_38 = arith.constant 0 : index
    %52 = vector.load %arg3[%c4_36, %c0_37, %c0_38] : memref<6x1x128xf32, #tpu.memory_space<vmem>>, vector<1x1x128xf32>
    %53 = vector.shape_cast %52 : vector<1x1x128xf32> to vector<1x128xf32>
    %54 = vector.broadcast %53 : vector<1x128xf32> to vector<8x128xf32>
    %55 = arith.addf %51, %54 : vector<8x128xf32>
    %cst_39 = arith.constant 0.000000e+00 : f32
    %56 = vector.broadcast %cst_39 : f32 to vector<8x128xf32>
    %57 = arith.cmpf ogt, %55, %56 : vector<8x128xf32>
    %cst_40 = arith.constant 0.00999999977 : f32
    %58 = vector.broadcast %cst_40 : f32 to vector<8x128xf32>
    %59 = arith.mulf %58, %55 : vector<8x128xf32>
    %60 = arith.select %57, %55, %59 : vector<8x128xi1>, vector<8x128xf32>
    %c5 = arith.constant 5 : index
    %c0_41 = arith.constant 0 : index
    %c0_42 = arith.constant 0 : index
    %61 = vector.load %arg2[%c5, %c0_41, %c0_42] : memref<6x128x128xf32, #tpu.memory_space<vmem>>, vector<1x128x128xf32>
    %62 = vector.shape_cast %61 : vector<1x128x128xf32> to vector<128x128xf32>
    %cst_43 = arith.constant dense<0.000000e+00> : vector<8x128xf32>
    %63 = tpu.matmul %60, %62, %cst_43 {dimension_numbers = #tpu.dot_dimension_numbers<[1], [0], [0], [1], [0, 0, 1, 1], [], []>} : vector<8x128xf32>, vector<128x128xf32>, vector<8x128xf32> -> vector<8x128xf32>
    %c5_44 = arith.constant 5 : index
    %c0_45 = arith.constant 0 : index
    %c0_46 = arith.constant 0 : index
    %64 = vector.load %arg3[%c5_44, %c0_45, %c0_46] : memref<6x1x128xf32, #tpu.memory_space<vmem>>, vector<1x1x128xf32>
    %65 = vector.shape_cast %64 : vector<1x1x128xf32> to vector<1x128xf32>
    %66 = vector.broadcast %65 : vector<1x128xf32> to vector<8x128xf32>
    %67 = arith.addf %63, %66 : vector<8x128xf32>
    %c0_47 = arith.constant 0 : index
    %c0_48 = arith.constant 0 : index
    %68 = vector.load %arg4[%c0_47, %c0_48] : memref<8x128xf32, #tpu.memory_space<vmem>>, vector<8x128xf32>
    tpu.vector_store %arg4[%c0_47, %c0_48], %67 {strides = array<i32>} : memref<8x128xf32, #tpu.memory_space<vmem>>, vector<8x128xf32>,
    return
  }
  func.func @transform_0(%arg0: i32) -> (i32, i32) {
    %c0_i32 = arith.constant 0 : i32
    %c0_i32_0 = arith.constant 0 : i32
    return %arg0, %c0_i32 : i32, i32
  }
  func.func @transform_1(%arg0: i32) -> (i32, i32, i32) {
    %c0_i32 = arith.constant 0 : i32
    %c0_i32_0 = arith.constant 0 : i32
    %c0_i32_1 = arith.constant 0 : i32
    %c0_i32_2 = arith.constant 0 : i32
    return %c0_i32, %c0_i32_0, %c0_i32_1 : i32, i32, i32
  }
  func.func @transform_2(%arg0: i32) -> (i32, i32, i32) {
    %c0_i32 = arith.constant 0 : i32
    %c0_i32_0 = arith.constant 0 : i32
    %c0_i32_1 = arith.constant 0 : i32
    %c0_i32_2 = arith.constant 0 : i32
    return %c0_i32, %c0_i32_0, %c0_i32_1 : i32, i32, i32
  }
  func.func @transform_3(%arg0: i32) -> (i32, i32) {
    %c0_i32 = arith.constant 0 : i32
    %c0_i32_0 = arith.constant 0 : i32
    return %arg0, %c0_i32 : i32, i32
  }
}

</mosaic_0001>

<bundles_post_ra>
// kernel: combined_model_forward.1
= control target key start
LH: loop header
LB: loop body
LE: loop exit
PB: predicated region body
PF: predicated region fallthrough
CT: control target
= control target key end

     0   :  { %v1153_v0 = vmov 0.0|0.0   ;;  %vm1154_vm0 = vmmov 0   ;;  %v1155_v4 = vmov 0.0   ;;  %s1548_s1 = inlined_call_operand.vmem [shape: f32[6,128,128], index: 1, kind: input, shape index: {}]   ;;  %s1549_s0 = inlined_call_operand.vmem [shape: f32[8,128], index: 0, kind: input, shape index: {}]   ;;  %s1550_s2 = inlined_call_operand.vmem [shape: f32[6,1,128], index: 2, kind: input, shape index: {}]   ;;  %s1551_s3 = inlined_call_operand.vmem [shape: f32[8,128], index: 3, kind: output, shape index: {}]  }
   0x1   :  { %1006 = vmatprep.subr.bf16.mxu0 %v1153_v0  ;;  %v15_v1 = vld [vmem:[%s1548_s1] sm:$0xff]  ;;  %v16_v2 = vld [vmem:[%s1548_s1 + $0x8] sm:$0xff]  ;;  %v17_v3 = vld [vmem:[%s1548_s1 + $0x10] sm:$0xff]  ;;  %828 = vmatprep.mubr.msk.f32.mxu0 %vm1154_vm0, %v1155_v4 }
   0x2   :  { %v1007_v5 = vpack.c.bf16 %v16_v2, %v15_v1  ;;  %v18_v6 = vld [vmem:[%s1548_s1 + $0x18] sm:$0xff]  ;;  %1030 = vmatprep.subr.bf16.mxu1 %v1153_v0  ;;  %863 = vmatprep.mubr.msk.f32.mxu1 %vm1154_vm0, %v1155_v4  ;;  %v19_v8 = vld [vmem:[%s1548_s1 + $0x20] sm:$0xff]  ;;  %v20_v9 = vld [vmem:[%s1548_s1 + $0x28] sm:$0xff] }
   0x3   :  { %v1010_v7 = vpack.c.bf16 %v18_v6, %v17_v3  ;;  %v604_v10 = vld [vmem:[%s1548_s1 + $0x80] sm:$0xff]  ;;  %v605_v11 = vld [vmem:[%s1548_s1 + $0x88] sm:$0xff]  ;;  %v606_v12 = vld [vmem:[%s1548_s1 + $0x90] sm:$0xff]  ;;  %v1013_v14 = vpack.c.bf16 %v20_v9, %v19_v8 }
   0x4   :  { %1008 = vmatpush3.bf16.msra.mxu0 %v1007_v5  ;;  %v607_v13 = vld [vmem:[%s1548_s1 + $0x98] sm:$0xff]  ;;  %v1031_v15 = vpack.c.bf16 %v605_v11, %v604_v10  ;;  %v21_v16 = vld [vmem:[%s1548_s1 + $0x30] sm:$0xff]  ;;  %v608_v19 = vld [vmem:[%s1548_s1 + $0xa0] sm:$0xff] }
   0x5   :  { %1009 = vmatprep.subr.bf16.mxu0 %v1153_v0  ;;  %v22_v17 = vld [vmem:[%s1548_s1 + $0x38] sm:$0xff]  ;;  %v1034_v18 = vpack.c.bf16 %v607_v13, %v606_v12  ;;  %v609_v20 = vld [vmem:[%s1548_s1 + $0xa8] sm:$0xff]  ;;  %v23_v22 = vld [vmem:[%s1548_s1 + $0x40] sm:$0xff] }
   0x6   :  { %1032 = vmatpush3.bf16.msra.mxu1 %v1031_v15  ;;  %v1016_v21 = vpack.c.bf16 %v22_v17, %v21_v16  ;;  %v24_v23 = vld [vmem:[%s1548_s1 + $0x48] sm:$0xff]  ;;  %v1037_v24 = vpack.c.bf16 %v609_v20, %v608_v19  ;;  %v610_v25 = vld [vmem:[%s1548_s1 + $0xb0] sm:$0xff]  ;;  %v611_v26 = vld [vmem:[%s1548_s1 + $0xb8] sm:$0xff] }
   0x7   :  { %1033 = vmatprep.subr.bf16.mxu1 %v1153_v0  ;;  %v1019_v27 = vpack.c.bf16 %v24_v23, %v23_v22  ;;  %v25_v28 = vld [vmem:[%s1548_s1 + $0x50] sm:$0xff]  ;;  %v26_v29 = vld [vmem:[%s1548_s1 + $0x58] sm:$0xff]  ;;  %v1040_v30 = vpack.c.bf16 %v611_v26, %v610_v25  ;;  %v612_v31 = vld [vmem:[%s1548_s1 + $0xc0] sm:$0xff] }
   0x8   :  { %1011 = vmatpush3.bf16.msra.mxu0 %v1010_v7  ;;  %v613_v32 = vld [vmem:[%s1548_s1 + $0xc8] sm:$0xff]  ;;  %v1022_v33 = vpack.c.bf16 %v26_v29, %v25_v28  ;;  %v27_v34 = vld [vmem:[%s1548_s1 + $0x60] sm:$0xff]  ;;  %v614_v37 = vld [vmem:[%s1548_s1 + $0xd0] sm:$0xff] }
   0x9   :  { %1012 = vmatprep.subr.bf16.mxu0 %v1153_v0  ;;  %v28_v35 = vld [vmem:[%s1548_s1 + $0x68] sm:$0xff]  ;;  %v1043_v36 = vpack.c.bf16 %v613_v32, %v612_v31  ;;  %v615_v38 = vld [vmem:[%s1548_s1 + $0xd8] sm:$0xff]  ;;  %v29_v40 = vld [vmem:[%s1548_s1 + $0x70] sm:$0xff] }
   0xa   :  { %1035 = vmatpush3.bf16.msra.mxu1 %v1034_v18  ;;  %v1025_v39 = vpack.c.bf16 %v28_v35, %v27_v34  ;;  %v30_v41 = vld [vmem:[%s1548_s1 + $0x78] sm:$0xff]  ;;  %v1046_v42 = vpack.c.bf16 %v615_v38, %v614_v37  ;;  %v616_v43 = vld [vmem:[%s1548_s1 + $0xe0] sm:$0xff]  ;;  %v617_v44 = vld [vmem:[%s1548_s1 + $0xe8] sm:$0xff] }
   0xb   :  { %1036 = vmatprep.subr.bf16.mxu1 %v1153_v0  ;;  %v1028_v45 = vpack.c.bf16 %v30_v41, %v29_v40  ;;  %v1049_v46 = vpack.c.bf16 %v617_v44, %v616_v43  ;;  %v14_v47 = vld [vmem:[%s1549_s0] sm:$0xff]  ;;  %v618_v48 = vld [vmem:[%s1548_s1 + $0xf0] sm:$0xff]  ;;  %v619_v49 = vld [vmem:[%s1548_s1 + $0xf8] sm:$0xff] }
   0xc   :  { %1014 = vmatpush3.bf16.msra.mxu0 %v1013_v14  ;;  %v1052_v50 = vpack.c.bf16 %v619_v49, %v618_v48  ;;  %v622_v51 = vld [vmem:[%s1548_s1 + $0x100] sm:$0xff]  ;;  %v623_v52 = vld [vmem:[%s1548_s1 + $0x108] sm:$0xff]  ;;  %v624_v53 = vld [vmem:[%s1548_s1 + $0x110] sm:$0xff] }
   0xd   :  { %1015 = vmatprep.subr.bf16.mxu0 %v1153_v0  ;;  %v1055_v54 = vpack.c.bf16 %v623_v52, %v622_v51  ;;  %v625_v55 = vld [vmem:[%s1548_s1 + $0x118] sm:$0xff]  ;;  %v626_v57 = vld [vmem:[%s1548_s1 + $0x120] sm:$0xff]  ;;  %v627_v58 = vld [vmem:[%s1548_s1 + $0x128] sm:$0xff] }
   0xe   :  { %1038 = vmatpush3.bf16.msra.mxu1 %v1037_v24  ;;  %v1058_v56 = vpack.c.bf16 %v625_v55, %v624_v53  ;;  %v1061_v59 = vpack.c.bf16 %v627_v58, %v626_v57  ;;  %v628_v60 = vld [vmem:[%s1548_s1 + $0x130] sm:$0xff]  ;;  %v629_v61 = vld [vmem:[%s1548_s1 + $0x138] sm:$0xff]  ;;  %v630_v63 = vld [vmem:[%s1548_s1 + $0x140] sm:$0xff] }
   0xf   :  { %1039 = vmatprep.subr.bf16.mxu1 %v1153_v0  ;;  %v1064_v62 = vpack.c.bf16 %v629_v61, %v628_v60  ;;  %v631_v1 = vld [vmem:[%s1548_s1 + $0x148] sm:$0xff]  ;;  %v632_v3 = vld [vmem:[%s1548_s1 + $0x150] sm:$0xff]  ;;  %v633_v5 = vld [vmem:[%s1548_s1 + $0x158] sm:$0xff] }
  0x10   :  { %1017 = vmatpush3.bf16.msra.mxu0 %v1016_v21  ;;  %v1067_v2 = vpack.c.bf16 %v631_v1, %v630_v63  ;;  %v1070_v6 = vpack.c.bf16 %v633_v5, %v632_v3  ;;  %v634_v7 = vld [vmem:[%s1548_s1 + $0x160] sm:$0xff]  ;;  %v635_v8 = vld [vmem:[%s1548_s1 + $0x168] sm:$0xff]  ;;  %v636_v16 = vld [vmem:[%s1548_s1 + $0x170] sm:$0xff] }
  0x11   :  { %1018 = vmatprep.subr.bf16.mxu0 %v1153_v0  ;;  %v1073_v9 = vpack.c.bf16 %v635_v8, %v634_v7  ;;  %v603_v10 = vld [vmem:[%s1550_s2] ss:$0 sm:$0xff]  ;;  %v637_v17 = vld [vmem:[%s1548_s1 + $0x178] sm:$0xff]  ;;  %v641_v20 = vld [vmem:[%s1548_s1 + $0x188] sm:$0xff] }
  0x12   :  { %1041 = vmatpush3.bf16.msra.mxu1 %v1040_v30  ;;  %v1076_v18 = vpack.c.bf16 %v637_v17, %v636_v16  ;;  %v640_v19 = vld [vmem:[%s1548_s1 + $0x180] sm:$0xff]  ;;  %v642_v21 = vld [vmem:[%s1548_s1 + $0x190] sm:$0xff]  ;;  %v643_v23 = vld [vmem:[%s1548_s1 + $0x198] sm:$0xff] }
  0x13   :  { %1042 = vmatprep.subr.bf16.mxu1 %v1153_v0  ;;  %v1079_v22 = vpack.c.bf16 %v641_v20, %v640_v19  ;;  %v1082_v24 = vpack.c.bf16 %v643_v23, %v642_v21  ;;  %v644_v25 = vld [vmem:[%s1548_s1 + $0x1a0] sm:$0xff]  ;;  %v645_v26 = vld [vmem:[%s1548_s1 + $0x1a8] sm:$0xff]  ;;  %v646_v28 = vld [vmem:[%s1548_s1 + $0x1b0] sm:$0xff] }
  0x14   :  { %1020 = vmatpush3.bf16.msra.mxu0 %v1019_v27  ;;  %v1085_v27 = vpack.c.bf16 %v645_v26, %v644_v25  ;;  %v647_v29 = vld [vmem:[%s1548_s1 + $0x1b8] sm:$0xff]  ;;  %v648_v31 = vld [vmem:[%s1548_s1 + $0x1c0] sm:$0xff]  ;;  %v649_v32 = vld [vmem:[%s1548_s1 + $0x1c8] sm:$0xff] }
  0x15   :  { %1021 = vmatprep.subr.bf16.mxu0 %v1153_v0  ;;  %v1088_v30 = vpack.c.bf16 %v647_v29, %v646_v28  ;;  %v650_v34 = vld [vmem:[%s1548_s1 + $0x1d0] sm:$0xff]  ;;  %v651_v35 = vld [vmem:[%s1548_s1 + $0x1d8] sm:$0xff]  ;;  %v652_v37 = vld [vmem:[%s1548_s1 + $0x1e0] sm:$0xff] }
  0x16   :  { %1044 = vmatpush3.bf16.msra.mxu1 %v1043_v36  ;;  %v1094_v36 = vpack.c.bf16 %v651_v35, %v650_v34  ;;  %v653_v38 = vld [vmem:[%s1548_s1 + $0x1e8] sm:$0xff]  ;;  %v621_v40 = vld [vmem:[%s1550_s2 + $0x1] ss:$0 sm:$0xff]  ;;  %v660_v51 = vld [vmem:[%s1548_s1 + $0x210] sm:$0xff] }
  0x17   :  { %1045 = vmatprep.subr.bf16.mxu1 %v1153_v0  ;;  %v658_v49 = vld [vmem:[%s1548_s1 + $0x200] sm:$0xff]  ;;  %v661_v53 = vld [vmem:[%s1548_s1 + $0x218] sm:$0xff]  ;;  %v664_v58 = vld [vmem:[%s1548_s1 + $0x230] sm:$0xff] }
  0x18   :  { %1023 = vmatpush3.bf16.msra.mxu0 %v1022_v33  ;;  %v1091_v33 = vpack.c.bf16 %v649_v32, %v648_v31  ;;  %v662_v55 = vld [vmem:[%s1548_s1 + $0x220] sm:$0xff]  ;;  %v668_v1 = vld [vmem:[%s1548_s1 + $0x250] sm:$0xff]  ;;  %v679_v20 = vld [vmem:[%s1548_s1 + $0x298] sm:$0xff] }
  0x19   :  { %1024 = vmatprep.subr.bf16.mxu0 %v1153_v0  ;;  %v666_v61 = vld [vmem:[%s1548_s1 + $0x240] sm:$0xff]  ;;  %v681_v23 = vld [vmem:[%s1548_s1 + $0x2a8] sm:$0xff]  ;;  %v682_v25 = vld [vmem:[%s1548_s1 + $0x2b0] sm:$0xff] }
  0x1a   :  { %1047 = vmatpush3.bf16.msra.mxu1 %v1046_v42  ;;  %v670_v5 = vld [vmem:[%s1548_s1 + $0x260] sm:$0xff]  ;;  %v683_v26 = vld [vmem:[%s1548_s1 + $0x2b8] sm:$0xff]  ;;  %v685_v29 = vld [vmem:[%s1548_s1 + $0x2c8] sm:$0xff] }
  0x1b   :  { %1048 = vmatprep.subr.bf16.mxu1 %v1153_v0  ;;  %v639_v8 = vld [vmem:[%s1550_s2 + $0x2] ss:$0 sm:$0xff]  ;;  %v686_v31 = vld [vmem:[%s1548_s1 + $0x2d0] sm:$0xff]  ;;  %v687_v32 = vld [vmem:[%s1548_s1 + $0x2d8] sm:$0xff] }
  0x1c   :  { %1026 = vmatpush3.bf16.msra.mxu0 %v1025_v39  ;;  %v1097_v39 = vpack.c.bf16 %v653_v38, %v652_v37  ;;  %v676_v17 = vld [vmem:[%s1548_s1 + $0x280] sm:$0xff]  ;;  %v689_v35 = vld [vmem:[%s1548_s1 + $0x2e8] sm:$0xff] }
  0x1d   :  { %1027 = vmatprep.subr.bf16.mxu0 %v1153_v0  ;;  %v684_v28 = vld [vmem:[%s1548_s1 + $0x2c0] sm:$0xff] }
  0x1e   :  { %1050 = vmatpush3.bf16.msra.mxu1 %v1049_v46  ;;  %v654_v46 = vld [vmem:[%s1548_s1 + $0x1f0] sm:$0xff]  ;;  %v688_v34 = vld [vmem:[%s1548_s1 + $0x2e0] sm:$0xff] }
  0x1f   :  { %1051 = vmatprep.subr.bf16.mxu1 %v1153_v0  ;;  %v657_v37 = vld [vmem:[%s1550_s2 + $0x3] ss:$0 sm:$0xff] }
  0x20   :  { %1029 = vmatpush3.bf16.msra.mxu0 %v1028_v45 }
  0x21   :  { %1054 = vmatprep.subr.bf16.mxu0 %v1153_v0 }
  0x22   :  { %1053 = vmatpush3.bf16.msra.mxu1 %v1052_v50  ;;  %v659_v50 = vld [vmem:[%s1548_s1 + $0x208] sm:$0xff] }
  0x23   :  { %829 = vmatmul.mubr.f32.vlgmr.msra.gmra.mrb[0].mxu0 %v14_v47  ;;  %1078 = vmatprep.subr.bf16.mxu1 %v1153_v0  ;;  %v655_v47 = vld [vmem:[%s1548_s1 + $0x1f8] sm:$0xff]  ;;  %v1103_v52 = vpack.c.bf16 %v659_v50, %v658_v49 }
  0x24   :  { %898 = vmatprep.mubr.msk.f32.mxu0 %vm1154_vm0, %v1155_v4  ;;  %1056 = vmatpush3.bf16.msra.mxu0 %v1055_v54  ;;  %v1100_v48 = vpack.c.bf16 %v655_v47, %v654_v46  ;;  %v1106_v54 = vpack.c.bf16 %v661_v53, %v660_v51  ;;  %v693_v51 = vld [vmem:[%s1550_s2 + $0x5] ss:$0 sm:$0xff] }
  0x25   :  { %1057 = vmatprep.subr.bf16.mxu0 %v1153_v0 }
  0x28   :  { %1059 = vmatpush3.bf16.msra.mxu0 %v1058_v56  ;;  %v663_v56 = vld [vmem:[%s1548_s1 + $0x228] sm:$0xff] }
  0x29   :  { %1060 = vmatprep.subr.bf16.mxu0 %v1153_v0  ;;  %v1109_v57 = vpack.c.bf16 %v663_v56, %v662_v55 }
  0x2c   :  { %1062 = vmatpush3.bf16.msra.mxu0 %v1061_v59  ;;  %v665_v59 = vld [vmem:[%s1548_s1 + $0x238] sm:$0xff] }
  0x2d   :  { %1063 = vmatprep.subr.bf16.mxu0 %v1153_v0  ;;  %v1112_v60 = vpack.c.bf16 %v665_v59, %v664_v58 }
  0x30   :  { %1065 = vmatpush3.bf16.msra.mxu0 %v1064_v62  ;;  %v667_v62 = vld [vmem:[%s1548_s1 + $0x248] sm:$0xff] }
  0x31   :  { %1066 = vmatprep.subr.bf16.mxu0 %v1153_v0  ;;  %v1115_v63 = vpack.c.bf16 %v667_v62, %v666_v61 }
  0x34   :  { %1068 = vmatpush3.bf16.msra.mxu0 %v1067_v2  ;;  %v669_v2 = vld [vmem:[%s1548_s1 + $0x258] sm:$0xff] }
  0x35   :  { %1069 = vmatprep.subr.bf16.mxu0 %v1153_v0  ;;  %v1118_v3 = vpack.c.bf16 %v669_v2, %v668_v1 }
  0x38   :  { %1071 = vmatpush3.bf16.msra.mxu0 %v1070_v6  ;;  %v671_v6 = vld [vmem:[%s1548_s1 + $0x268] sm:$0xff] }
  0x39   :  { %1072 = vmatprep.subr.bf16.mxu0 %v1153_v0  ;;  %v1121_v7 = vpack.c.bf16 %v671_v6, %v670_v5 }
  0x3c   :  { %1074 = vmatpush3.bf16.msra.mxu0 %v1073_v9 }
  0x3d   :  { %1075 = vmatprep.subr.bf16.mxu0 %v1153_v0 }
  0x40   :  { %1077 = vmatpush3.bf16.msra.mxu0 %v1076_v18  ;;  %v677_v18 = vld [vmem:[%s1548_s1 + $0x288] sm:$0xff] }
  0x41   :  { %1102 = vmatprep.subr.bf16.mxu0 %v1153_v0  ;;  %v1127_v19 = vpack.c.bf16 %v677_v18, %v676_v17 }
  0xf6   :  { %v104_v11 = vpop.f32.mrb[0].mxu0 }
  0xf7   :  { %v105_v12 = vadd.f32 %v603_v10, %v104_v11  ;;  %v830_v13 = vpop.f32.mrb[1].mxu0 }
  0xf9   :  { %v109_v14 = vmul.f32 0.01, %v105_v12  ;;  %vm108_vm1 = vcmp.gt.f32.partialorder %v105_v12, 0.0 }
  0xfb   :  { %v110_v15 = vsel %vm108_vm1, %v105_v12, %v109_v14  ;;  %v672_v14 = vld [vmem:[%s1548_s1 + $0x270] sm:$0xff] }
  0xfc   :  { %864 = vmatmul.mubr.f32.vlgmr.msra.gmra.mrb[0].mxu1 %v110_v15  ;;  %v673_v15 = vld [vmem:[%s1548_s1 + $0x278] sm:$0xff] }
  0xfd   :  { %933 = vmatprep.mubr.msk.f32.mxu1 %vm1154_vm0, %v1155_v4  ;;  %1080 = vmatpush3.bf16.msra.mxu1 %v1079_v22  ;;  %v1124_v16 = vpack.c.bf16 %v673_v15, %v672_v14  ;;  %v680_v22 = vld [vmem:[%s1548_s1 + $0x2a0] sm:$0xff] }
  0xfe   :  { %1081 = vmatprep.subr.bf16.mxu1 %v1153_v0 }
 0x101   :  { %1083 = vmatpush3.bf16.msra.mxu1 %v1082_v24  ;;  %v1133_v24 = vpack.c.bf16 %v681_v23, %v680_v22 }
 0x102   :  { %1084 = vmatprep.subr.bf16.mxu1 %v1153_v0 }
 0x105   :  { %1086 = vmatpush3.bf16.msra.mxu1 %v1085_v27  ;;  %v1136_v27 = vpack.c.bf16 %v683_v26, %v682_v25 }
 0x106   :  { %1087 = vmatprep.subr.bf16.mxu1 %v1153_v0 }
 0x109   :  { %1089 = vmatpush3.bf16.msra.mxu1 %v1088_v30  ;;  %v1139_v30 = vpack.c.bf16 %v685_v29, %v684_v28 }
 0x10a   :  { %1090 = vmatprep.subr.bf16.mxu1 %v1153_v0 }
 0x10d   :  { %1092 = vmatpush3.bf16.msra.mxu1 %v1091_v33  ;;  %v1142_v33 = vpack.c.bf16 %v687_v32, %v686_v31 }
 0x10e   :  { %1093 = vmatprep.subr.bf16.mxu1 %v1153_v0 }
 0x111   :  { %1095 = vmatpush3.bf16.msra.mxu1 %v1094_v36  ;;  %v1145_v36 = vpack.c.bf16 %v689_v35, %v688_v34 }
 0x112   :  { %1096 = vmatprep.subr.bf16.mxu1 %v1153_v0 }
 0x115   :  { %1098 = vmatpush3.bf16.msra.mxu1 %v1097_v39 }
 0x116   :  { %1099 = vmatprep.subr.bf16.mxu1 %v1153_v0 }
 0x119   :  { %1101 = vmatpush3.bf16.msra.mxu1 %v1100_v48 }
 0x11a   :  { %1126 = vmatprep.subr.bf16.mxu1 %v1153_v0 }
 0x1cf   :  { %v202_v41 = vpop.f32.mrb[0].mxu1 }
 0x1d0   :  { %v203_v42 = vadd.f32 %v621_v40, %v202_v41  ;;  %v865_v43 = vpop.f32.mrb[1].mxu1 }
 0x1d1   :  { %v690_v43 = vld [vmem:[%s1548_s1 + $0x2f0] sm:$0xff] }
 0x1d2   :  { %vm206_vm2 = vcmp.gt.f32.partialorder %v203_v42, 0.0  ;;  %v207_v44 = vmul.f32 0.01, %v203_v42 }
 0x1d4   :  { %v208_v45 = vsel %vm206_vm2, %v203_v42, %v207_v44  ;;  %v691_v44 = vld [vmem:[%s1548_s1 + $0x2f8] sm:$0xff] }
 0x1d5   :  { %899 = vmatmul.mubr.f32.vlgmr.msra.gmra.mrb[2].mxu0 %v208_v45  ;;  %v675_v45 = vld [vmem:[%s1550_s2 + $0x4] ss:$0 sm:$0xff] }
 0x1d6   :  { %968 = vmatprep.mubr.msk.f32.mxu0 %vm1154_vm0, %v1155_v4  ;;  %1104 = vmatpush3.bf16.msra.mxu0 %v1103_v52 }
 0x1d7   :  { %1105 = vmatprep.subr.bf16.mxu0 %v1153_v0 }
 0x1da   :  { %1107 = vmatpush3.bf16.msra.mxu0 %v1106_v54 }
 0x1db   :  { %1108 = vmatprep.subr.bf16.mxu0 %v1153_v0 }
 0x1de   :  { %1110 = vmatpush3.bf16.msra.mxu0 %v1109_v57 }
 0x1df   :  { %1111 = vmatprep.subr.bf16.mxu0 %v1153_v0 }
 0x1e2   :  { %1113 = vmatpush3.bf16.msra.mxu0 %v1112_v60 }
 0x1e3   :  { %1114 = vmatprep.subr.bf16.mxu0 %v1153_v0 }
 0x1e6   :  { %1116 = vmatpush3.bf16.msra.mxu0 %v1115_v63 }
 0x1e7   :  { %1117 = vmatprep.subr.bf16.mxu0 %v1153_v0 }
 0x1ea   :  { %1119 = vmatpush3.bf16.msra.mxu0 %v1118_v3 }
 0x1eb   :  { %1120 = vmatprep.subr.bf16.mxu0 %v1153_v0 }
 0x1ee   :  { %1122 = vmatpush3.bf16.msra.mxu0 %v1121_v7 }
 0x1ef   :  { %1123 = vmatprep.subr.bf16.mxu0 %v1153_v0 }
 0x1f2   :  { %1125 = vmatpush3.bf16.msra.mxu0 %v1124_v16 }
 0x2a8   :  { %v300_v9 = vpop.f32.mrb[2].mxu0 }
 0x2a9   :  { %v301_v10 = vadd.f32 %v639_v8, %v300_v9  ;;  %v900_v11 = vpop.f32.mrb[3].mxu0 }
 0x2ab   :  { %vm304_vm3 = vcmp.gt.f32.partialorder %v301_v10, 0.0  ;;  %v305_v12 = vmul.f32 0.01, %v301_v10 }
 0x2ad   :  { %v306_v13 = vsel %vm304_vm3, %v301_v10, %v305_v12 }
 0x2ae   :  { %934 = vmatmul.mubr.f32.vlgmr.msra.gmra.mrb[2].mxu1 %v306_v13 }
 0x2af   :  { %1003 = vmatprep.mubr.msk.f32.mxu1 %vm1154_vm0, %v1155_v4  ;;  %v678_v4 = vld [vmem:[%s1548_s1 + $0x290] sm:$0xff]  ;;  %1128 = vmatpush3.bf16.msra.mxu1 %v1127_v19 }
 0x2b0   :  { %v1130_v21 = vpack.c.bf16 %v679_v20, %v678_v4  ;;  %1129 = vmatprep.subr.bf16.mxu1 %v1153_v0 }
 0x2b3   :  { %1131 = vmatpush3.bf16.msra.mxu1 %v1130_v21 }
 0x2b4   :  { %1132 = vmatprep.subr.bf16.mxu1 %v1153_v0 }
 0x2b7   :  { %1134 = vmatpush3.bf16.msra.mxu1 %v1133_v24 }
 0x2b8   :  { %1135 = vmatprep.subr.bf16.mxu1 %v1153_v0 }
 0x2bb   :  { %1137 = vmatpush3.bf16.msra.mxu1 %v1136_v27 }
 0x2bc   :  { %1138 = vmatprep.subr.bf16.mxu1 %v1153_v0 }
 0x2bf   :  { %1140 = vmatpush3.bf16.msra.mxu1 %v1139_v30 }
 0x2c0   :  { %1141 = vmatprep.subr.bf16.mxu1 %v1153_v0 }
 0x2c3   :  { %1143 = vmatpush3.bf16.msra.mxu1 %v1142_v33 }
 0x2c4   :  { %1144 = vmatprep.subr.bf16.mxu1 %v1153_v0 }
 0x2c7   :  { %1146 = vmatpush3.bf16.msra.mxu1 %v1145_v36 }
 0x2c8   :  { %1147 = vmatprep.subr.bf16.mxu1 %v1153_v0  ;;  %v1148_v0 = vpack.c.bf16 %v691_v44, %v690_v43 }
 0x2cb   :  { %1149 = vmatpush3.bf16.msra.mxu1 %v1148_v0 }
 0x381   :  { %v398_v38 = vpop.f32.mrb[2].mxu1 }
 0x382   :  { %v399_v39 = vadd.f32 %v657_v37, %v398_v38  ;;  %v935_v40 = vpop.f32.mrb[3].mxu1 }
 0x384   :  { %vm402_vm4 = vcmp.gt.f32.partialorder %v399_v39, 0.0  ;;  %v403_v41 = vmul.f32 0.01, %v399_v39 }
 0x386   :  { %v404_v42 = vsel %vm402_vm4, %v399_v39, %v403_v41 }
 0x387   :  { %969 = vmatmul.mubr.f32.vlgmr.msra.gmra.mrb[4].mxu0 %v404_v42 }
 0x45a   :  { %v496_v46 = vpop.f32.mrb[4].mxu0 }
 0x45b   :  { %v497_v47 = vadd.f32 %v675_v45, %v496_v46  ;;  %v970_v48 = vpop.f32.mrb[5].mxu0 }
 0x45d   :  { %vm500_vm5 = vcmp.gt.f32.partialorder %v497_v47, 0.0  ;;  %v501_v49 = vmul.f32 0.01, %v497_v47 }
 0x45f   :  { %v502_v50 = vsel %vm500_vm5, %v497_v47, %v501_v49 }
 0x460   :  { %1004 = vmatmul.mubr.f32.vlgmr.msra.gmra.mrb[4].mxu1 %v502_v50 }
 0x533   :  { %v594_v52 = vpop.f32.mrb[4].mxu1 }
 0x534   :  { %v595_v53 = vadd.f32 %v693_v51, %v594_v52  ;;  %v1005_v54 = vpop.f32.mrb[5].mxu1 }
 0x536   :  { %598 = vst [vmem:[%s1551_s3] sm:$0xff] %v595_v53 }

</bundles_post_ra>
